<compile_context>
chip_gen: v5e
topology: v5e:2x2
jax: 0.10.0
libtpu: 0.0.40
codegen_flags: <defaults>
</compile_context>

<pallas_src>
import functools

import jax
import jax.numpy as jnp
from jax.experimental import pallas as pl
from jax.experimental.pallas import tpu as pltpu


def _head_kernel(x_ref, w_ref, o_ref, *, head_size):
    # x_ref block : (Bb, T, C) f32
    # w_ref block : (C, 3H)    f32   (columns ordered [q | k | v])
    # o_ref block : (Bb, T, H) f32
    H = head_size
    x = x_ref[...]
    Bb, T, C = x.shape
    w = w_ref[...]

    # ---- fused QKV projection: one MXU pass, M = Bb*T, N = 3H, bf16 in / f32 acc
    x_bf = x.reshape(Bb * T, C).astype(jnp.bfloat16)
    w_bf = w.astype(jnp.bfloat16)
    qkv = jnp.dot(x_bf, w_bf, preferred_element_type=jnp.float32)  # (Bb*T, 3H)

    q = qkv[:, 0 * H:1 * H].reshape(Bb, T, H)
    k = qkv[:, 1 * H:2 * H].reshape(Bb, T, H)
    v = qkv[:, 2 * H:3 * H].reshape(Bb, T, H)

    # ---- scores: contract the shared H axis directly (no k.T materialization)
    scale = jnp.float32(H) ** -0.5
    wei = jax.lax.dot_general(
        q.astype(jnp.bfloat16), k.astype(jnp.bfloat16),
        dimension_numbers=(((2,), (2,)), ((0,), (0,))),
        preferred_element_type=jnp.float32) * scale               # (Bb, T, T)

    # ---- causal (lower-triangular) mask; diagonal always unmasked so -inf is safe
    row = jax.lax.broadcasted_iota(jnp.int32, (T, T), 0)
    col = jax.lax.broadcasted_iota(jnp.int32, (T, T), 1)
    wei = jnp.where((row >= col)[None, :, :], wei, -jnp.inf)

    # ---- numerically stable softmax in f32; reciprocal goes to the EUP slot
    wei = wei - jnp.max(wei, axis=-1, keepdims=True)
    wei = jnp.exp(wei)
    wei = wei * pl.reciprocal(jnp.sum(wei, axis=-1, keepdims=True), approx=True)

    # ---- attention output: wei @ v (batched), bf16 operands / f32 acc
    out = jax.lax.dot_general(
        wei.astype(jnp.bfloat16), v.astype(jnp.bfloat16),
        dimension_numbers=(((2,), (1,)), ((0,), (0,))),
        preferred_element_type=jnp.float32)                       # (Bb, T, H)

    o_ref[...] = out.astype(o_ref.dtype)


def _pick_batch_block(B):
    """Largest batch block that still leaves >= 2 grid steps (v7x: 2 TCs)."""
    for d in range(B // 2, 0, -1):
        if B % d == 0:
            return d
    return max(B, 1)


def head_forward(x, w_key, w_query, w_value, *, batch_block=None,
                 vmem_limit_bytes=None):
    """x: (B, T, C) f32; w_*: (C, head_size). Returns (B, T, head_size) f32."""
    B, T, C = x.shape
    H = w_key.shape[1]

    # Fuse the three projections into a single (C, 3H) weight, ordered [q|k|v].
    w_qkv = jnp.concatenate([w_query, w_key, w_value], axis=1)

    bb = batch_block if batch_block is not None else _pick_batch_block(B)
    assert B % bb == 0, "batch_block must divide batch"

    kernel = functools.partial(_head_kernel, head_size=H)

    compiler_params = pltpu.CompilerParams(
        dimension_semantics=("parallel",),
        vmem_limit_bytes=vmem_limit_bytes,
    )

    return pl.pallas_call(
        kernel,
        out_shape=jax.ShapeDtypeStruct((B, T, H), x.dtype),
        grid_spec=pltpu.PrefetchScalarGridSpec(
            num_scalar_prefetch=0,
            grid=(B // bb,),
            in_specs=[
                pl.BlockSpec((bb, T, C), lambda b: (b, 0, 0)),
                pl.BlockSpec((C, 3 * H), lambda b: (0, 0)),
            ],
            out_specs=pl.BlockSpec((bb, T, H), lambda b: (b, 0, 0)),
        ),
        compiler_params=compiler_params,
    )(x, w_qkv)


def reference_forward(x, w_key, w_query, w_value):
    """Pure-JAX f32 reference mirroring the PyTorch module (eval mode)."""
    k = x @ w_key
    q = x @ w_query
    v = x @ w_value
    H = k.shape[-1]
    wei = jnp.einsum("btd,bsd->bts", q, k) * (H ** -0.5)
    T = x.shape[1]
    tril = jnp.tril(jnp.ones((T, T), dtype=bool))
    wei = jnp.where(tril[None, :, :], wei, -jnp.inf)
    wei = jax.nn.softmax(wei, axis=-1)
    return wei @ v


if __name__ == "__main__":
    # Small shapes consistent with the module:
    # batch=2, block_size (seq) T=8, n_embd C=32, head_size=16, dropout=0.0 (eval).
    B, T, C, H = 2, 8, 32, 16

    key = jax.random.PRNGKey(0)
    kx, kk, kq, kv = jax.random.split(key, 4)

    x = jax.random.normal(kx, (B, T, C), dtype=jnp.float32)
    # Deterministic parameter init (analogous to nn.Linear weights, stored as (C, H)).
    w_key = jax.random.normal(kk, (C, H), dtype=jnp.float32) * (C ** -0.5)
    w_query = jax.random.normal(kq, (C, H), dtype=jnp.float32) * (C ** -0.5)
    w_value = jax.random.normal(kv, (C, H), dtype=jnp.float32) * (C ** -0.5)

    out = head_forward(x, w_key, w_query, w_value)
    out = jax.block_until_ready(out)

    ref = reference_forward(x, w_key, w_query, w_value)
    assert out.shape == (B, T, H)
    # Tolerance relaxed vs the pure-f32 reference: MXU matmuls run in bf16
    # (f32 accumulate) and the softmax denominator uses the approx reciprocal.
    assert jnp.allclose(out, ref, atol=3e-2, rtol=3e-2), (
        "mismatch vs reference: max abs diff = "
        f"{float(jnp.max(jnp.abs(out - ref)))}"
    )

    print("KERNEL_OK")
</pallas_src>

<mosaic_0001>
module attributes {stable_mosaic.version = 11 : i64} {
  func.func @_head_kernel(%arg0: i32, %arg1: memref<1x8x32xf32, #tpu.memory_space<vmem>>, %arg2: memref<32x48xf32, #tpu.memory_space<vmem>>, %arg3: memref<1x8x16xf32, #tpu.memory_space<vmem>>) attributes {dimension_semantics = [#tpu.dimension_semantics<parallel>], iteration_bounds = array<i64: 2>, scalar_prefetch = 0 : i64, scratch_operands = 0 : i64, tpu.core_type = #tpu.core_type<tc>, window_params = [{transform_indices = @transform_0, window_bounds = array<i64: 1, 8, 32>}, {pipeline_mode = #tpu.pipeline_mode<synchronous>, transform_indices = @transform_1, window_bounds = array<i64: 32, 48>}, {transform_indices = @transform_2, window_bounds = array<i64: 1, 8, 16>}]} {
    %c0 = arith.constant 0 : index
    %c0_0 = arith.constant 0 : index
    %c0_1 = arith.constant 0 : index
    %0 = vector.load %arg1[%c0, %c0_0, %c0_1] : memref<1x8x32xf32, #tpu.memory_space<vmem>>, vector<1x8x32xf32>
    %c0_2 = arith.constant 0 : index
    %c0_3 = arith.constant 0 : index
    %1 = vector.load %arg2[%c0_2, %c0_3] : memref<32x48xf32, #tpu.memory_space<vmem>>, vector<32x48xf32>
    %2 = vector.shape_cast %0 : vector<1x8x32xf32> to vector<8x32xf32>
    %3 = arith.truncf %2 : vector<8x32xf32> to vector<8x32xbf16>
    %4 = arith.truncf %1 : vector<32x48xf32> to vector<32x48xbf16>
    %cst = arith.constant dense<0.000000e+00> : vector<8x48xf32>
    %5 = tpu.matmul %3, %4, %cst {dimension_numbers = #tpu.dot_dimension_numbers<[1], [0], [0], [1], [0, 0, 1, 1], [], []>} : vector<8x32xbf16>, vector<32x48xbf16>, vector<8x48xf32> -> vector<8x48xf32>
    %6 = vector.extract_strided_slice %5 {offsets = [0, 0], sizes = [8, 16], strides = [1, 1]} : vector<8x48xf32> to vector<8x16xf32>
    %7 = vector.shape_cast %6 : vector<8x16xf32> to vector<1x8x16xf32>
    %8 = vector.extract_strided_slice %5 {offsets = [0, 16], sizes = [8, 16], strides = [1, 1]} : vector<8x48xf32> to vector<8x16xf32>
    %9 = vector.shape_cast %8 : vector<8x16xf32> to vector<1x8x16xf32>
    %10 = vector.extract_strided_slice %5 {offsets = [0, 32], sizes = [8, 16], strides = [1, 1]} : vector<8x48xf32> to vector<8x16xf32>
    %11 = vector.shape_cast %10 : vector<8x16xf32> to vector<1x8x16xf32>
    %cst_4 = arith.constant 1.600000e+01 : f32
    %cst_5 = arith.constant -5.000000e-01 : f32
    %12 = math.powf %cst_4, %cst_5 : f32
    %13 = arith.truncf %7 : vector<1x8x16xf32> to vector<1x8x16xbf16>
    %14 = arith.truncf %9 : vector<1x8x16xf32> to vector<1x8x16xbf16>
    %cst_6 = arith.constant dense<0.000000e+00> : vector<1x8x8xf32>
    %15 = tpu.matmul %13, %14, %cst_6 {dimension_numbers = #tpu.dot_dimension_numbers<[2], [2], [1], [1], [0, 0, 0, 1, 1, 1], [0], [0]>} : vector<1x8x16xbf16>, vector<1x8x16xbf16>, vector<1x8x8xf32> -> vector<1x8x8xf32>
    %16 = vector.broadcast %12 : f32 to vector<1x8x8xf32>
    %17 = arith.mulf %15, %16 : vector<1x8x8xf32>
    %18 = tpu.iota {dimensions = array<i32: 0>} : vector<8x8xi32>
    %19 = tpu.iota {dimensions = array<i32: 1>} : vector<8x8xi32>
    %20 = arith.cmpi sge, %18, %19 : vector<8x8xi32>
    %21 = vector.shape_cast %20 : vector<8x8xi1> to vector<1x8x8xi1>
    %cst_7 = arith.constant 0xFF800000 : f32
    %22 = vector.broadcast %cst_7 : f32 to vector<1x8x8xf32>
    %23 = arith.select %21, %17, %22 : vector<1x8x8xi1>, vector<1x8x8xf32>
    %cst_8 = arith.constant dense<0xFF800000> : vector<1x8xf32>
    %24 = vector.multi_reduction <maximumf>, %23, %cst_8 [2] : vector<1x8x8xf32> to vector<1x8xf32>
    %25 = vector.shape_cast %24 : vector<1x8xf32> to vector<1x8x1xf32>
    %26 = vector.broadcast %25 : vector<1x8x1xf32> to vector<1x8x8xf32>
    %27 = arith.subf %23, %26 : vector<1x8x8xf32>
    %28 = math.exp %27 : vector<1x8x8xf32>
    %cst_9 = arith.constant dense<0.000000e+00> : vector<1x8xf32>
    %29 = vector.multi_reduction <add>, %28, %cst_9 [2] : vector<1x8x8xf32> to vector<1x8xf32>
    %30 = vector.shape_cast %29 : vector<1x8xf32> to vector<1x8x1xf32>
    %31 = tpu.reciprocal %30 {approx = true} : vector<1x8x1xf32> -> vector<1x8x1xf32>
    %32 = vector.broadcast %31 : vector<1x8x1xf32> to vector<1x8x8xf32>
    %33 = arith.mulf %28, %32 : vector<1x8x8xf32>
    %34 = arith.truncf %33 : vector<1x8x8xf32> to vector<1x8x8xbf16>
    %35 = arith.truncf %11 : vector<1x8x16xf32> to vector<1x8x16xbf16>
    %cst_10 = arith.constant dense<0.000000e+00> : vector<1x8x16xf32>
    %36 = tpu.matmul %34, %35, %cst_10 {dimension_numbers = #tpu.dot_dimension_numbers<[2], [1], [1], [2], [0, 0, 0, 1, 1, 2], [0], [0]>} : vector<1x8x8xbf16>, vector<1x8x16xbf16>, vector<1x8x16xf32> -> vector<1x8x16xf32>
    %c0_11 = arith.constant 0 : index
    %c0_12 = arith.constant 0 : index
    %c0_13 = arith.constant 0 : index
    %37 = vector.load %arg3[%c0_11, %c0_12, %c0_13] : memref<1x8x16xf32, #tpu.memory_space<vmem>>, vector<1x8x16xf32>
    tpu.vector_store %arg3[%c0_11, %c0_12, %c0_13], %36 {strides = array<i32>} : memref<1x8x16xf32, #tpu.memory_space<vmem>>, vector<1x8x16xf32>,
    return
  }
  func.func @transform_0(%arg0: i32) -> (i32, i32, i32) {
    %c0_i32 = arith.constant 0 : i32
    %c0_i32_0 = arith.constant 0 : i32
    %c0_i32_1 = arith.constant 0 : i32
    return %arg0, %c0_i32, %c0_i32_0 : i32, i32, i32
  }
  func.func @transform_1(%arg0: i32) -> (i32, i32) {
    %c0_i32 = arith.constant 0 : i32
    %c0_i32_0 = arith.constant 0 : i32
    %c0_i32_1 = arith.constant 0 : i32
    return %c0_i32, %c0_i32_0 : i32, i32
  }
  func.func @transform_2(%arg0: i32) -> (i32, i32, i32) {
    %c0_i32 = arith.constant 0 : i32
    %c0_i32_0 = arith.constant 0 : i32
    %c0_i32_1 = arith.constant 0 : i32
    return %arg0, %c0_i32, %c0_i32_0 : i32, i32, i32
  }
}

</mosaic_0001>

<bundles_post_ra>
// kernel: tpu_custom_call.1
= control target key start
LH: loop header
LB: loop body
LE: loop exit
PB: predicated region body
PF: predicated region fallthrough
CT: control target
= control target key end

     0   :  { %7 = vsyncpa [#allocation3], 0  ;;  %s749_s0 = inlined_call_operand.hbm [shape: f32[2,8,32], index: 0, kind: input, shape index: {}]   ;;  %s750_s1 = inlined_call_operand.hbm [shape: f32[32,48], index: 1, kind: input, shape index: {}]   ;;  %s751_s2 = inlined_call_operand.hbm [shape: f32[2,8,16], index: 2, kind: output, shape index: {}]  }
   0x1   :  { %9 = vsyncpa [#allocation3 + $0x1], 0 }
   0x2   :  { %10 = vsyncpa [#allocation6], 0 }
   0x3   :  { %11 = vsyncpa [#allocation4], 0 }
   0x4   :  { %13 = vsyncpa [#allocation4 + $0x1], 0  ;;  %s603_s9 = smov 0   ;;  %s605_s10 = smov 0  }
   0x5   :  { %s607_s11 = smov 0   ;;  %s609_s12 = smov 0  }
   0x6 LB: > { %s108_s15 = sshll.u32 %s750_s1, 4  ;;  %s627_s16 = sadd.s32 4294967295, %s581_s12   ;;  %s581_s12 = sphi %s609_s12, %s761_s12   ;;  %s577_s11 = sphi %s607_s11, %s760_s11   ;;  %s573_s10 = sphi %s605_s10, %s759_s10   ;;  %s569_s9 = sphi %s603_s9, %s758_s9   ;;  %s109_s15 = int_to_ptr.hbm [resolvable:$true] %s108_s15 }
   0x7   : > { %p370_p0 = scmp.ge.s32.totalorder %s581_s12, 1  ;;  %p40_p1 = scmp.eq.s32.totalorder %s627_s16, 0 }
   0x8   : > { %p97_p2 = scmp.lt.s32.totalorder %s581_s12, 3  ;;  %s583_s18 = smov [#allocation5]  }
   0x9   : > { %s110_s19 = sshll.u32 %s583_s18, 4  ;;  %s584_s20 = smov 128   ;;  %s111_s19 = int_to_ptr.vmem [resolvable:$true] %s110_s19 }
   0xa   : > { %p632_p3 = pnand %p370_p0, %p97_p2  ;;  %s585_s21 = smov 8  }
   0xb   : > { %s369_s22 = sadd.s32 4294967294, %s581_s12   ;;  %s643_s23 = sadd.s32 1, %s581_s12  }
   0xc   : > { %p394_p4 = pneg %p632_p3  ;;  %s26_s24 = sadd.s32 1, %s577_s11 }
   0xd   : > { %s23_s25 = ssub.s32 %s581_s12, %s643_s23  ;;  %p33_p7 = scmp.ne.s32.totalorder %s577_s11, %s573_s10 }
   0xe   : > { %p395_p6 = pnand %p394_p4, %p40_p1  ;;  %p24_p8 = scmp.eq.s32.totalorder %s23_s25, 0 }
   0xf   : > { %p34_p9 = scmp.eq.s32.totalorder %s581_s12, 0  ;;  %p39_p10 = scmp.ne.s32.totalorder %s573_s10, %s569_s9 }
  0x10   : > { %397 = dma.hbm_to_vmem [thread:$0]  (!%p395_p6), %s109_s15, 512, %s111_s19, [#allocation6], %s584_s20, %s584_s20, %s585_s21  }
  0x11   : > { %p84_p11 = scmp.eq.s32.totalorder %s627_s16, 1  ;;  %p659_p12 = por %p40_p1, %p39_p10 }
  0x12   : > { %s655_s26 = scalar_select %p24_p8, %s577_s11, %s26_s24  }
  0x13   : > { %p663_p13 = por %p84_p11, %p33_p7  ;;  %p90_p0 = scmp.eq.s32.totalorder %s369_s22, 1 }
  0x14   : > { %p35_p2 = por %p34_p9, %p33_p7  ;;  %s124_s29 = sand.u32 1, %s577_s11  }
  0x15   : > { %p668_p4 = por %p90_p0, %p39_p10  ;;  %p407_p6 = scmp.lt.s32.totalorder %s581_s12, 2 }
  0x16   : > { %s373_s3 = sshll.u32 %s124_s29, 3  ;;  %s374_s4 = sshll.u32 %s581_s12, 3 }
  0x17   : > { %s132_s7 = scalar_lea.hbm %s749_s0, %s374_s4  ;;  %s128_s13 = scalar_lea.vmem [#allocation2], %s373_s3 }
  0x18   : > { %s134_s8 = sshll.u32 %s132_s7, 4  ;;  %s136_s14 = sshll.u32 %s128_s13, 4  ;;  %s135_s8 = int_to_ptr.hbm [resolvable:$true] %s134_s8  ;;  %s137_s14 = int_to_ptr.vmem [resolvable:$true] %s136_s14 }
  0x19   : > { %p677_p8 = pnand %p407_p6, %p35_p2  ;;  %s125_s18 = scalar_lea.sflag [#allocation3], %s124_s29 }
  0x1a   : > { %s481_s19 = sshra.s32 %s135_s8, 4  ;;  %s488_s24 = scalar_lea.hbm %s749_s0, 16  ;;  %s482_s19 = int_to_ptr.hbm [resolvable:$true] %s481_s19 }
  0x1b   : > { %s483_s20 = scalar_lea.hbm %s482_s19, 8  ;;  %p485_p9 = pneg %p677_p8 }
  0x1c   : > { %p484_p7 = scmp.ne.s32.totalorder %s482_s19, %s483_s20  ;;  %p489_p0 = scmp.lt.s32.totalorder %s482_s19, %s749_s0 }
  0x1d   : > { %p490_p2 = scmp.lt.s32.totalorder %s488_s24, %s483_s20 }
  0x1e   : > { %p486_p10 = pnand %p485_p9, %p484_p7 }
  0x1f   : > { %p491_p6 = por %p490_p2, %p489_p0 }
  0x20   : > { %p487_p11 = pneg %p486_p10 }
  0x22   : > { %p492_p5 = pnand %p491_p6, %p487_p11 }
  0x24   : > { %495 = shalt.err (!%p492_p5)
}
  0x25   : > { %401 = dma.hbm_to_vmem [thread:$0]  (!%p677_p8), %s135_s8, 128, %s137_s14, %s125_s18  }
  0x26   : > { %145 = sbr.rel (%p632_p3) target bundleno = 853 (0x355), region = 28  ;;  %s694_s29 = sand.u32 (!%p632_p3), 1, %s573_s10  }
  0x27   : > { %s376_s4 = sshll.u32 (!%p632_p3), %s694_s29, 3  ;;  %s148_s5 = scalar_lea.sflag (!%p632_p3), [#allocation3], %s694_s29 }
  0x28   : > { %s151_s6 = scalar_lea.vmem (!%p632_p3), [#allocation2], %s376_s4 }
  0x2b   : > { %556 = dma.done.wait (%p659_p12), %s148_s5, 128  }
  0x2c   : > { %558 = vsyncadd (%p659_p12), %s148_s5, 4294967168 }
  0x2d   : > { %560 = dma.done.wait (%p40_p1), [#allocation6], 512  }
  0x2e   : > { %562 = vsyncadd (%p40_p1), [#allocation6], 4294966784  ;;  %v182_v0 = vld [vmem:[#allocation5 + $0x10] sm:$0xff]  ;;  %v183_v1 = vld [vmem:[#allocation5 + $0x18] sm:$0xff]  ;;  %vm187_vm0 = vcmask 261120   ;;  %s586_s17 = smov 112   ;;  %v231_v15 = vlaneseq }
  0x2f   : > { %v180_v2 = vld [vmem:[#allocation5] sm:$0xff]  ;;  %v186_v3 = vpack.c.bf16 %v183_v1, %v182_v0  ;;  %v181_v4 = vld [vmem:[#allocation5 + $0x8] sm:$0xff]  ;;  %v179_v6 = vld [vmem:[%s151_s6] sm:$0xff]  ;;  %vm210_vm1 = vcmask 130048   ;;  %vm237_vm3 = vcmask 64512   ;;  %s587_s27 = smov 96  }
  0x30   : > { %v185_v5 = vpack.c.bf16 %v181_v4, %v180_v2  ;;  %v184_v7 = vpack.c.bf16 %v179_v6, %v179_v6  ;;  %v232_v16 = vshrl.u32 %v231_v15, 7  ;;  %v234_v17 = vand.u32 127, %v231_v15  ;;  %s383_s7 = sshll.u32 %s627_s16, 3  ;;  %s177_s15 = scalar_lea.vmem [#allocation7], %s376_s4 }
  0x31   : > { %197 = vmatpush.bf16.msra.mxu0 %v186_v3  ;;  %vm255_vm4 = vcmask 1043456   ;;  %s284_s14 = scalar_lea.hbm %s751_s2, %s383_s7  ;;  %s286_s18 = sshll.u32 %s177_s15, 4  ;;  %s287_s18 = int_to_ptr.vmem [resolvable:$true] %s286_s18 }
  0x32   : > { %vm235_vm2 = vcmp.ge.s32.totalorder %v232_v16, %v234_v17  ;;  %s288_s19 = sshll.u32 %s284_s14, 4  ;;  %s274_s20 = scalar_lea.sflag [#allocation4], %s694_s29  ;;  %s289_s19 = int_to_ptr.hbm [resolvable:$true] %s288_s19 }
  0x33   : > { %s525_s21 = sshra.s32 %s289_s19, 4  ;;  %s531_s25 = scalar_lea.hbm %s751_s2, 16  ;;  %s526_s21 = int_to_ptr.hbm [resolvable:$true] %s525_s21 }
  0x34   : > { %s527_s22 = scalar_lea.hbm %s526_s21, 8  ;;  %p532_p12 = scmp.lt.s32.totalorder %s526_s21, %s751_s2 }
  0x35   : > { %198 = vmatpush.bf16.msra.mxu0 %v185_v5  ;;  %p528_p1 = scmp.ne.s32.totalorder %s526_s21, %s527_s22  ;;  %p533_p8 = scmp.lt.s32.totalorder %s531_s25, %s527_s22 }
  0x37   : > { %p529_p3 = pnand %p528_p1, %p663_p13  ;;  %p534_p7 = por %p533_p8, %p532_p12 }
  0x38   : > { %379 = vmatmul.msk.bf16.vlgmr.msra.gmra.mxu0 %vm187_vm0, %v184_v7 }
  0x39   : > { %p530_p5 = pneg %p529_p3 }
  0x3b   : > { %p535_p9 = pnand %p534_p7, %p530_p5 }
  0xb5   : > { %v200_v8 = vpop.f32.mrf.mxu0 }
  0xb6   : > { %v204_v9 = vpack.c.bf16 %v200_v8, %v200_v8 }
  0xb8   : > { %v206_v10 = vunpack.c.l.b16 %v204_v9 }
  0xba   : > { %v207_v11 = vpack.c.b16 %v206_v10, %v206_v10 }
  0xbc   : > { %208 = vrot.lane.b32.xlu0 %v207_v11, %s586_s17 }
  0xbd   : > { %v202_v12 = vpop.f32.mrf.mxu0 }
 0x12e   : > { %v209_v13 = vpop.permute.xlu0 %208 }
 0x12f   : > { %v215_v14 = vsel %vm210_vm1, %v209_v13, 0 }
 0x130   : > { %224 = vmatpush.bf16.xpose.msra.mxu1 %v215_v14 }
 0x137   : > { %380 = vmatmul.msk.bf16.vlgmr.msra.gmra.mxu1 %vm210_vm1, %v204_v9 }
 0x1b4   : > { %v226_v18 = vpop.f32.mrf.mxu1 }
 0x1b5   : > { %v230_v19 = vmul.f32 0.25, %v226_v18 }
 0x1b7   : > { %v236_v20 = vsel %vm235_vm2, %v230_v19, -inf }
 0x1b8   : > { %v238_v21 = vsel %vm237_vm3, %v236_v20, -inf }
 0x1b9   : > { %239 = vmax.xlane.f32.xlu0 %v238_v21 }
 0x1bc   : > { %v228_v22 = vpop.f32.mrf.mxu1 }
 0x22c   : > { %v240_v23 = vpop.xlane.xlu0 %239 }
 0x22d   : > { %v241_v24 = vsub.f32 %v236_v20, %v240_v23 }
 0x22f   : > { %v242_v25 = vmul.f32 1.442695, %v241_v24 }
 0x231   : > { %447 = vpow2.f32 %v242_v25 }
 0x237   : > { %v448_v26 = vpop.eup %447 }
 0x238   : > { %v244_v27 = vsel %vm237_vm3, %v448_v26, 0.0 }
 0x239   : > { %245 = vadd.xlane.f32.xlu1 %v244_v27 }
 0x252   : > { %250 = vrot.lane.b32.xlu1 %v207_v11, %s587_s27 }
 0x2ac   : > { %v246_v28 = vpop.xlane.xlu1 %245 }
 0x2ad   : > { %449 = vrcp.f32 %v246_v28 }
 0x2b3   : > { %v450_v29 = vpop.eup %449 }
 0x2b4   : > { %v248_v30 = vmul.f32 %v450_v29, %v448_v26 }
 0x2b6   : > { %v249_v33 = vpack.c.bf16 %v248_v30, %v248_v30 }
 0x2c4   : > { %v251_v31 = vpop.permute.xlu1 %250 }
 0x2c5   : > { %v257_v32 = vsel %vm255_vm4, %v251_v31, 0 }
 0x2c6   : > { %266 = vmatpush.bf16.msra.mxu2 %v257_v32 }
 0x2c9   : > { %381 = vmatmul.msk.bf16.vlgmr.msra.gmra.mxu2 %vm237_vm3, %v249_v33 }
 0x34c   : > { %v268_v34 = vpop.f32.mrf.mxu2 }
 0x34d   : > { %272 = vst.msk [vmem:[%s177_s15] sm:$0xff] %vm210_vm1, %v268_v34 }
 0x34e   : > { %538 = shalt.err (!%p535_p9)
}
 0x34f   : > { %392 = dma.vmem_to_hbm [thread:$0]  (%p663_p13), %s287_s18, 128, %s289_s19, %s274_s20  }
 0x354   : > { %v270_v35 = vpop.f32.mrf.mxu2 }
 0x355 PF: > { %s300_s29 = sand.u32 1, %s569_s9   ;;  %p757_p10 = scmp.ge.s32.totalorder %s581_s12, 2 }
 0x356   : > { %s301_s5 = scalar_lea.sflag [#allocation4], %s300_s29 }
 0x357   : > { %p403_p11 = pnand %p757_p10, %p668_p4 }
 0x359   : > { %p404_p0 = pneg %p403_p11 }
 0x35b   : > { %564 = dma.done.wait (%p404_p0), %s301_s5, 128  }
 0x35c   : > { %566 = vsyncadd (%p404_p0), %s301_s5, 4294967168  ;;  %p16_p2 = scmp.ge.s32.totalorder %s643_s23, 4   ;;  %s758_s9 = smov %s573_s10 }
 0x35d   : > { %s759_s10 = smov %s577_s11  ;;  %s760_s11 = smov %s655_s26 }
 0x35e   : > { %s761_s12 = smov %s643_s23  ;;  %18 = sbr.rel (!%p16_p2) target bundleno = 6 (0x6), region = 77 }
 0x363   :  { %307 = vsyncpa [#allocation3], 1 }
 0x364   :  { %309 = vsyncpa [#allocation3 + $0x1], 1 }
 0x365   :  { %310 = vsyncpa [#allocation6], 1 }
 0x366   :  { %311 = vsyncpa [#allocation4], 1 }
 0x367   :  { %313 = vsyncpa [#allocation4 + $0x1], 1 }

</bundles_post_ra>
